<compile_context>
chip_gen: v7x
topology: tpu7x:2x2x1
jax: 0.10.0
libtpu: 0.0.40
codegen_flags: <defaults>
</compile_context>

<pallas_src>
import jax
import jax.numpy as jnp
from jax.experimental import pallas as pl
from jax.experimental.pallas import tpu as pltpu


def _attention_condition_kernel(x_ref, w_ref, emb_ref, o_ref):
    # x_ref  : VMEM [tT, Dx]
    # w_ref  : VMEM [tT, K]
    # emb_ref: VMEM [K, E]      (speaker embedding row, resident across T tiles)
    # o_ref  : VMEM [tT, Dx+E]
    dx = x_ref.shape[-1]
    k_dim = w_ref.shape[-1]
    e_dim = emb_ref.shape[-1]

    # Tiny emb row: hoist the load once, in f32.
    emb = emb_ref[...].astype(jnp.float32)

    if k_dim >= 64 and e_dim >= 128:
        # Contraction large enough to be worth the MXU fill/drain.
        att = jnp.dot(w_ref[...].astype(jnp.float32), emb,
                      preferred_element_type=jnp.float32)
    else:
        # Tiny K and/or narrow E: unrolled VPU broadcast-FMA chain.  Slice
        # each w column from the ref so the padded w tile never sits in vregs.
        att = w_ref[:, 0:1].astype(jnp.float32) * emb[0:1, :]
        for k in range(1, k_dim):
            att = att + w_ref[:, k:k + 1].astype(jnp.float32) * emb[k:k + 1, :]

    if dx % 128 == 0:
        # Both halves are lane-dense on their own -> two unmasked stores.
        o_ref[:, :dx] = x_ref[...]
        o_ref[:, dx:] = att.astype(o_ref.dtype)
    else:
        # Dx and Dx+E share the same 128-lane tile -> one fused store instead
        # of two masked vst's (matters most on v5e's single vst slot).
        o_ref[...] = jnp.concatenate(
            [x_ref[...], att.astype(o_ref.dtype)], axis=-1)


def attention_condition(x, weight, speaker_id, emb_table, dictionary_size,
                        emb_dim, *, t_block=4096, force_pallas=False):
    """x: [B, T, Dx], weight: [B, T, K], speaker_id: [B] int,
    emb_table: [num_of_spk, K*E].  Returns [B, T, Dx + E] in x.dtype."""
    B, T, Dx = x.shape
    K, E = dictionary_size, emb_dim
    assert weight.shape == (B, T, K)
    assert emb_table.shape[-1] == K * E

    # Embedding lookup in the wrapper (tiny gather, fused by XLA).
    # NOTE: out-of-range speaker_id is clamped here, unlike torch.nn.Embedding.
    spkemb = emb_table[speaker_id.astype(jnp.int32)].reshape(B, K, E)

    isz_x = jnp.dtype(x.dtype).itemsize
    isz_w = jnp.dtype(weight.dtype).itemsize
    isz_e = jnp.dtype(spkemb.dtype).itemsize

    total_bytes = (x.size * isz_x + weight.size * isz_w + spkemb.size * isz_e
                   + B * T * (Dx + E) * isz_x)

    if total_bytes < (512 << 10) and not force_pallas:
        # Tiny problem: pallas_call launch + per-step overhead would dominate.
        att = jnp.einsum("btk,bke->bte", weight, spkemb)
        return jnp.concatenate([x, att.astype(x.dtype)], axis=-1)

    # ---- T tile selection with lane-PADDED VMEM accounting -------------------
    def _lane_pad(n):
        return -(-n // 128) * 128

    # Per logical row, per pipeline buffer set (x + w + out blocks).
    bytes_per_row = (_lane_pad(Dx) * isz_x + _lane_pad(K) * isz_w
                     + _lane_pad(Dx + E) * isz_x)
    # Stay well inside v5e's 16 MiB scoped-VMEM default, double-buffered.
    vmem_budget = 12 << 20
    tT_cap = max(8, (vmem_budget // (2 * bytes_per_row)) // 8 * 8)

    t_block = max(8, (int(t_block) // 8) * 8)   # keep sublane-aligned
    tT = min(t_block, tT_cap)
    if T <= tT:
        tT = T                                   # full (possibly small) T dim
    grid = (B, pl.cdiv(T, tT))

    out_shape = jax.ShapeDtypeStruct((B, T, Dx + E), x.dtype)

    cost = pl.CostEstimate(
        flops=2 * B * T * K * E,
        transcendentals=0,
        bytes_accessed=total_bytes,
    )

    grid_spec = pltpu.PrefetchScalarGridSpec(
        num_scalar_prefetch=0,
        grid=grid,
        in_specs=[
            pl.BlockSpec((pl.Squeezed(), tT, Dx), lambda b, t: (b, t, 0)),
            pl.BlockSpec((pl.Squeezed(), tT, K), lambda b, t: (b, t, 0)),
            # index_map independent of t -> embedding row stays VMEM-resident.
            pl.BlockSpec((pl.Squeezed(), K, E), lambda b, t: (b, 0, 0)),
        ],
        out_specs=pl.BlockSpec((pl.Squeezed(), tT, Dx + E),
                               lambda b, t: (b, t, 0)),
    )

    return pl.pallas_call(
        _attention_condition_kernel,
        out_shape=out_shape,
        grid_spec=grid_spec,
        cost_estimate=cost,
        compiler_params=pltpu.CompilerParams(
            # Every (b, t) tile is independent -> megacore sharding on v7x,
            # harmless on single-TC v5e/v6e.
            dimension_semantics=("parallel", "parallel"),
        ),
    )(x, weight, spkemb)


def _reference(x, weight, speaker_id, emb_table, K, E):
    spkemb = emb_table[speaker_id].reshape(-1, K, E)
    att = jnp.einsum("btk,bke->bte", weight, spkemb)
    return jnp.concatenate([x, att.astype(x.dtype)], axis=-1)


if __name__ == "__main__":
    # Module config
    num_of_spk = 8
    dictionary_size = 4
    emb_dim = 32

    key = jax.random.PRNGKey(0)
    k1, k2, k3, k4, k5, k6 = jax.random.split(key, 6)

    # Deterministic parameter init (Embedding weight ~ N(0,1), torch default)
    emb_table = jax.random.normal(
        k1, (num_of_spk, emb_dim * dictionary_size), dtype=jnp.float32
    )

    # --- Case 1: tiny shapes (dispatcher routes to fused XLA path) -----------
    B, T, Dx = 2, 8, 32
    x = jax.random.normal(k2, (B, T, Dx), dtype=jnp.float32)
    weight = jax.random.normal(k3, (B, T, dictionary_size), dtype=jnp.float32)
    speaker_id = jax.random.randint(k4, (B,), 0, num_of_spk, dtype=jnp.int32)

    out_small = attention_condition(
        x, weight, speaker_id, emb_table, dictionary_size, emb_dim
    )
    out_small = jax.block_until_ready(out_small)
    ref_small = _reference(x, weight, speaker_id, emb_table,
                           dictionary_size, emb_dim)
    assert out_small.shape == (B, T, Dx + emb_dim)
    assert jnp.allclose(out_small, ref_small, atol=1e-5, rtol=1e-5)

    # --- Case 2: force the Pallas path at the same tiny shape ----------------
    out_pallas_small = attention_condition(
        x, weight, speaker_id, emb_table, dictionary_size, emb_dim,
        force_pallas=True,
    )
    out_pallas_small = jax.block_until_ready(out_pallas_small)
    assert jnp.allclose(out_pallas_small, ref_small, atol=1e-5, rtol=1e-5)

    # --- Case 3: longer sequence, multi-tile grid through the kernel ---------
    B2, T2 = 2, 1024
    x2 = jax.random.normal(k5, (B2, T2, Dx), dtype=jnp.float32)
    w2 = jax.random.normal(k6, (B2, T2, dictionary_size), dtype=jnp.float32)
    sid2 = jnp.array([1, 5], dtype=jnp.int32)

    out2 = attention_condition(
        x2, w2, sid2, emb_table, dictionary_size, emb_dim,
        t_block=256, force_pallas=True,   # tT=256 -> grid (2, 4), multi-tile T
    )
    out2 = jax.block_until_ready(out2)
    ref2 = _reference(x2, w2, sid2, emb_table, dictionary_size, emb_dim)
    assert out2.shape == (B2, T2, Dx + emb_dim)
    assert jnp.allclose(out2, ref2, atol=1e-5, rtol=1e-5)

    print("KERNEL_OK")
</pallas_src>

<mosaic_0001>
module attributes {stable_mosaic.version = 11 : i64} {
  func.func @_attention_condition_kernel(%arg0: i32, %arg1: i32, %arg2: memref<1x8x32xf32, #tpu.memory_space<vmem>>, %arg3: memref<1x8x4xf32, #tpu.memory_space<vmem>>, %arg4: memref<1x4x32xf32, #tpu.memory_space<vmem>>, %arg5: memref<1x8x64xf32, #tpu.memory_space<vmem>>) attributes {dimension_semantics = [#tpu.dimension_semantics<parallel>, #tpu.dimension_semantics<parallel>], iteration_bounds = array<i64: 2, 1>, scalar_prefetch = 0 : i64, scratch_operands = 0 : i64, tpu.core_type = #tpu.core_type<tc>, window_params = [{transform_indices = @transform_0, window_bounds = array<i64: 1, 8, 32>}, {transform_indices = @transform_1, window_bounds = array<i64: 1, 8, 4>}, {transform_indices = @transform_2, window_bounds = array<i64: 1, 4, 32>}, {transform_indices = @transform_3, window_bounds = array<i64: 1, 8, 64>}]} {
    %c0 = arith.constant 0 : index
    %c0_0 = arith.constant 0 : index
    %c0_1 = arith.constant 0 : index
    %0 = vector.load %arg4[%c0, %c0_0, %c0_1] : memref<1x4x32xf32, #tpu.memory_space<vmem>>, vector<1x4x32xf32>
    %1 = vector.shape_cast %0 : vector<1x4x32xf32> to vector<4x32xf32>
    %c0_2 = arith.constant 0 : index
    %c0_3 = arith.constant 0 : index
    %c0_4 = arith.constant 0 : index
    %2 = vector.load %arg3[%c0_2, %c0_3, %c0_4] : memref<1x8x4xf32, #tpu.memory_space<vmem>>, vector<1x8x1xf32>
    %3 = vector.shape_cast %2 : vector<1x8x1xf32> to vector<8x1xf32>
    %4 = vector.extract_strided_slice %1 {offsets = [0, 0], sizes = [1, 32], strides = [1, 1]} : vector<4x32xf32> to vector<1x32xf32>
    %5 = vector.broadcast %3 : vector<8x1xf32> to vector<8x32xf32>
    %6 = vector.broadcast %4 : vector<1x32xf32> to vector<8x32xf32>
    %7 = arith.mulf %5, %6 : vector<8x32xf32>
    %c0_5 = arith.constant 0 : index
    %c0_6 = arith.constant 0 : index
    %c1 = arith.constant 1 : index
    %8 = vector.load %arg3[%c0_5, %c0_6, %c1] : memref<1x8x4xf32, #tpu.memory_space<vmem>>, vector<1x8x1xf32>
    %9 = vector.shape_cast %8 : vector<1x8x1xf32> to vector<8x1xf32>
    %10 = vector.extract_strided_slice %1 {offsets = [1, 0], sizes = [1, 32], strides = [1, 1]} : vector<4x32xf32> to vector<1x32xf32>
    %11 = vector.broadcast %9 : vector<8x1xf32> to vector<8x32xf32>
    %12 = vector.broadcast %10 : vector<1x32xf32> to vector<8x32xf32>
    %13 = arith.mulf %11, %12 : vector<8x32xf32>
    %14 = arith.addf %7, %13 : vector<8x32xf32>
    %c0_7 = arith.constant 0 : index
    %c0_8 = arith.constant 0 : index
    %c2 = arith.constant 2 : index
    %15 = vector.load %arg3[%c0_7, %c0_8, %c2] : memref<1x8x4xf32, #tpu.memory_space<vmem>>, vector<1x8x1xf32>
    %16 = vector.shape_cast %15 : vector<1x8x1xf32> to vector<8x1xf32>
    %17 = vector.extract_strided_slice %1 {offsets = [2, 0], sizes = [1, 32], strides = [1, 1]} : vector<4x32xf32> to vector<1x32xf32>
    %18 = vector.broadcast %16 : vector<8x1xf32> to vector<8x32xf32>
    %19 = vector.broadcast %17 : vector<1x32xf32> to vector<8x32xf32>
    %20 = arith.mulf %18, %19 : vector<8x32xf32>
    %21 = arith.addf %14, %20 : vector<8x32xf32>
    %c0_9 = arith.constant 0 : index
    %c0_10 = arith.constant 0 : index
    %c3 = arith.constant 3 : index
    %22 = vector.load %arg3[%c0_9, %c0_10, %c3] : memref<1x8x4xf32, #tpu.memory_space<vmem>>, vector<1x8x1xf32>
    %23 = vector.shape_cast %22 : vector<1x8x1xf32> to vector<8x1xf32>
    %24 = vector.extract_strided_slice %1 {offsets = [3, 0], sizes = [1, 32], strides = [1, 1]} : vector<4x32xf32> to vector<1x32xf32>
    %25 = vector.broadcast %23 : vector<8x1xf32> to vector<8x32xf32>
    %26 = vector.broadcast %24 : vector<1x32xf32> to vector<8x32xf32>
    %27 = arith.mulf %25, %26 : vector<8x32xf32>
    %28 = arith.addf %21, %27 : vector<8x32xf32>
    %c0_11 = arith.constant 0 : index
    %c0_12 = arith.constant 0 : index
    %c0_13 = arith.constant 0 : index
    %29 = vector.load %arg2[%c0_11, %c0_12, %c0_13] : memref<1x8x32xf32, #tpu.memory_space<vmem>>, vector<1x8x32xf32>
    %30 = vector.shape_cast %29 : vector<1x8x32xf32> to vector<8x32xf32>
    %31 = tpu.concatenate %30, %28 in 1 : vector<8x32xf32>, vector<8x32xf32> -> vector<8x64xf32>
    %c0_14 = arith.constant 0 : index
    %c0_15 = arith.constant 0 : index
    %c0_16 = arith.constant 0 : index
    %32 = vector.load %arg5[%c0_14, %c0_15, %c0_16] : memref<1x8x64xf32, #tpu.memory_space<vmem>>, vector<1x8x64xf32>
    %33 = vector.shape_cast %32 : vector<1x8x64xf32> to vector<8x64xf32>
    %34 = vector.shape_cast %31 : vector<8x64xf32> to vector<1x8x64xf32>
    tpu.vector_store %arg5[%c0_14, %c0_15, %c0_16], %34 {strides = array<i32>} : memref<1x8x64xf32, #tpu.memory_space<vmem>>, vector<1x8x64xf32>,
    return
  }
  func.func @transform_0(%arg0: i32, %arg1: i32) -> (i32, i32, i32) {
    %c0_i32 = arith.constant 0 : i32
    %c0_i32_0 = arith.constant 0 : i32
    return %arg0, %arg1, %c0_i32 : i32, i32, i32
  }
  func.func @transform_1(%arg0: i32, %arg1: i32) -> (i32, i32, i32) {
    %c0_i32 = arith.constant 0 : i32
    %c0_i32_0 = arith.constant 0 : i32
    return %arg0, %arg1, %c0_i32 : i32, i32, i32
  }
  func.func @transform_2(%arg0: i32, %arg1: i32) -> (i32, i32, i32) {
    %c0_i32 = arith.constant 0 : i32
    %c0_i32_0 = arith.constant 0 : i32
    %c0_i32_1 = arith.constant 0 : i32
    return %arg0, %c0_i32, %c0_i32_0 : i32, i32, i32
  }
  func.func @transform_3(%arg0: i32, %arg1: i32) -> (i32, i32, i32) {
    %c0_i32 = arith.constant 0 : i32
    %c0_i32_0 = arith.constant 0 : i32
    return %arg0, %arg1, %c0_i32 : i32, i32, i32
  }
}

</mosaic_0001>

<bundles_post_ra>
// kernel: tpu_custom_call.1
= control target key start
LH: loop header
LB: loop body
LE: loop exit
PB: predicated region body
PF: predicated region fallthrough
CT: control target
= control target key end

     0   :  { %8 = vsyncpa [#allocation3], 0  ;;  %s710_s0 = inlined_call_operand.vmem [shape: f32[2,8,32], index: 0, kind: input, shape index: {}]   ;;  %s711_s1 = inlined_call_operand.vmem [shape: f32[2,8,4], index: 1, kind: input, shape index: {}]   ;;  %s712_s2 = inlined_call_operand.vmem [shape: f32[2,4,32], index: 2, kind: input, shape index: {}]   ;;  %s713_s3 = inlined_call_operand.hbm [shape: f32[2,8,64], index: 3, kind: output, shape index: {}]  }
   0x1   :  { %10 = vsyncpa [#allocation3 + $0x1], 0  ;;  %s584_s12 = smov 0   ;;  %s586_s13 = smov 0  }
   0x2   :  { %s588_s14 = smov 0   ;;  %s590_s15 = smov 0  }
   0x3   :  { %s592_s16 = smov 0   ;;  %s594_s17 = smov 0  }
   0x4 LB: > { %s400_s18 = sadd.s32 4294967295, %s556_s17   ;;  %s401_s19 = sadd.s32 4294967294, %s556_s17   ;;  %s556_s17 = sphi %s594_s17, %s16_s17   ;;  %s552_s16 = sphi %s592_s16, %s720_s16   ;;  %s548_s15 = sphi %s590_s15, %s719_s15   ;;  %s544_s14 = sphi %s588_s14, %s718_s14   ;;  %s540_s13 = sphi %s586_s13, %s717_s13   ;;  %s536_s12 = sphi %s584_s12, %s716_s12  }
   0x5   : > { %s28_s20 = sadd.s32 1, %s552_s16  ;;  %s119_s21 = sadd.s32 1, %s544_s14 }
   0x6   : > { %p30_p0 = scmp.ge.s32.totalorder %s28_s20, 2  ;;  %p129_p1 = scmp.ne.s32.totalorder %s544_s14, %s540_s13 }
   0x7   : > { %p130_p2 = scmp.eq.s32.totalorder %s400_s18, 1  ;;  %p135_p3 = scmp.ne.s32.totalorder %s540_s13, %s536_s12 }
   0x8   : > { %s722_s20 = smov (%p30_p0, %s28_s20), 0  ;;  %p136_p5 = scmp.eq.s32.totalorder %s401_s19, 1 }
   0x9   : > { %p624_p4 = por %p130_p2, %p129_p1  ;;  %s114_s23 = ssub.s32 %s552_s16, %s722_s20 }
   0xa   : > { %p404_p6 = scmp.ge.s32.totalorder %s556_s17, 1  ;;  %p117_p7 = scmp.eq.s32.totalorder %s114_s23, 0 }
   0xb   : > { %p631_p8 = por %p136_p5, %p135_p3  ;;  %p181_p9 = scmp.lt.s32.totalorder %s556_s17, 3 }
   0xc   : > { %s637_s25 = scalar_select %p117_p7, %s544_s14, %s119_s21  }
   0xd   : > { %p182_p10 = pnand %p404_p6, %p181_p9 }
   0xe   : > { %p218_p11 = scmp.lt.s32.totalorder (!%p182_p10), %s548_s15, 1  ;;  %v558_v0 = vmov (!%p182_p10), 0   ;;  %v559_v1 = vmov (!%p182_p10), 2   ;;  %v560_v3 = vmov (!%p182_p10), 1   ;;  %v561_v4 = vmov (!%p182_p10), 3   ;;  %s562_s8 = smov (!%p182_p10), 32  }
   0xf   : > { %185 = sbr.rel (%p182_p10) target bundleno = 298 (0x12a), region = 32  ;;  %473 = vset.pattern.permute.xlu0 (!%p182_p10), %v558_v0  ;;  %475 = vset.pattern.permute.xlu1 (!%p182_p10), %v559_v1  ;;  %v243_v5 = vlaneseq (!%p182_p10)  ;;  %s215_s9 = sand.u32 (!%p182_p10), 1, %s540_s13   ;;  %vm283_vm0 = vcmask (!%p182_p10), 261120   ;;  %vm285_vm1 = vcmask (!%p182_p10), 523264  }
  0x10   : > { %s405_s10 = sshll.u32 (!%p182_p10), %s215_s9, 3  ;;  %s410_s21 = sshll.u32 (!%p182_p10), %s548_s15, 7 }
  0x11   : > { %v244_v6 = vshrl.u32 (!%p182_p10), %v243_v5, 7  ;;  %s217_s23 = scalar_lea.vmem (!%p182_p10), [#allocation2], %s405_s10 }
  0x12   : > { %s302_s28 = sshll.u32 (!%p182_p10), %s217_s23, 4  ;;  %s665_s28 = int_to_ptr.vmem [resolvable:$true] %s302_s28 }
  0x13   : > { %v245_v7 = vsub.s32 (!%p182_p10), 0, %v244_v6  ;;  %v254_v8 = vsub.s32 (!%p182_p10), 1, %v244_v6  ;;  %v264_v11 = vsub.s32 (!%p182_p10), 2, %v244_v6  ;;  %v274_v13 = vsub.s32 (!%p182_p10), 3, %v244_v6 }
  0x16   : > { %s641_s26 = scalar_select %p218_p11, %s548_s15, 1 }
  0x17   : > { %s478_s15 = scalar_lea.vmem %s665_s28, 128 }
  0x18   : > { %s406_s27 = sshll.u32 %s641_s26, 3  ;;  %s408_s4 = sshll.u32 %s641_s26, 2 }
  0x19   : > { %s231_s30 = scalar_lea.vmem %s711_s1, %s406_s27  ;;  %s235_s7 = scalar_lea.vmem %s712_s2, %s408_s4 }
  0x1a   : > { %v237_v2 = vld [vmem:[%s231_s30] sm:$0xff]  ;;  %s224_s19 = scalar_lea.vmem %s710_s0, %s406_s27  ;;  %s663_s4 = scalar_lea.hbm %s713_s3, %s410_s21 }
  0x1b   : > { %240 = vperm.xlu0 %473, %v237_v2   ;;  %259 = vperm.xlu1 %475, %v237_v2   ;;  %v236_v9 = vld [vmem:[%s235_s7] sm:$0xf]  ;;  %s288_s26 = scalar_lea.sflag [#allocation3], %s215_s9  ;;  %p479_p12 = scmp.ne.s32.totalorder %s665_s28, %s478_s15 }
  0x1c   : > { %v246_v14 = vrot.slane %v236_v9, %v245_v7  ;;  %v255_v15 = vrot.slane %v236_v9, %v254_v8  ;;  %v265_v16 = vrot.slane %v236_v9, %v264_v11  ;;  %v275_v17 = vrot.slane %v236_v9, %v274_v13  ;;  %v278_v27 = vld [vmem:[%s224_s19] sm:$0xff]  ;;  %s563_s27 = smov [#allocation2]  }
  0x1d   : > { %p480_p13 = pnand %p479_p12, %p624_p4  ;;  %s482_s5 = sshll.u32 %s563_s27, 4  ;;  %s483_s5 = int_to_ptr.vmem [resolvable:$false] %s482_s5 }
  0x1e   : > { %s484_s6 = scalar_lea.vmem %s483_s5, 256  ;;  %p485_p1 = scmp.lt.s32.totalorder %s665_s28, %s483_s5 }
  0x1f   : > { %474 = vset.pattern.permute.xlu0 %v560_v3  ;;  %476 = vset.pattern.permute.xlu1 %v561_v4  ;;  %p481_p0 = pneg %p480_p13  ;;  %p486_p2 = scmp.lt.s32.totalorder %s484_s6, %s478_s15 }
  0x20   : > { %249 = vperm.xlu0 %474, %v237_v2   ;;  %269 = vperm.xlu1 %476, %v237_v2  }
  0x21   : > { %p487_p3 = por %p486_p2, %p485_p1 }
  0x23   : > { %p488_p5 = pnand %p487_p3, %p481_p0 }
  0x24   : > { %477 = vset.pattern.permute.xlu0 %v561_v4 }
  0x9a   : > { %v241_v10 = vpop.permute.xlu0 %240  ;;  %v260_v12 = vpop.permute.xlu1 %259 }
  0x9b   : > { %v247_v20 = vmul.f32 %v246_v14, %v241_v10  ;;  %v266_v22 = vmul.f32 %v265_v16, %v260_v12 }
  0x9f   : > { %v250_v18 = vpop.permute.xlu0 %249  ;;  %v270_v19 = vpop.permute.xlu1 %269 }
  0xa0   : > { %v256_v21 = vmul.f32 %v255_v15, %v250_v18  ;;  %v276_v24 = vmul.f32 %v275_v17, %v270_v19 }
  0xa2   : > { %v257_v23 = vadd.f32 %v256_v21, %v247_v20 }
  0xa4   : > { %v267_v25 = vadd.f32 %v266_v22, %v257_v23 }
  0xa6   : > { %v277_v26 = vadd.f32 %v276_v24, %v267_v25 }
  0xa8   : > { %280 = vrot.lane.b32.xlu1 %v277_v26, %s562_s8 }
 0x11a   : > { %v281_v28 = vpop.permute.xlu1 %280 }
 0x11b   : > { %v284_v29 = vsel %vm283_vm0, %v278_v27, %v281_v28 }
 0x11c   : > { %286 = vst.msk [vmem:[%s217_s23] sm:$0xff] %vm285_vm1, %v284_v29 }
 0x11d   : > { %491 = shalt.err (!%p488_p5)
}
 0x11e   : > { %s492_s7 = scalar_lea.hbm %s663_s4, 128  ;;  %s496_s10 = scalar_lea.hbm %s713_s3, 256 }
 0x11f   : > { %p493_p6 = scmp.ne.s32.totalorder %s663_s4, %s492_s7  ;;  %p497_p10 = scmp.lt.u32.totalorder %s663_s4, %s713_s3 }
 0x120   : > { %p498_p11 = scmp.lt.u32.totalorder %s496_s10, %s492_s7  ;;  %p500_p13 = scmp.lt.u32.totalorder %s492_s7, %s663_s4 }
 0x121   : > { %p494_p7 = pnand %p493_p6, %p624_p4 }
 0x122   : > { %p499_p12 = por %p498_p11, %p497_p10 }
 0x123   : > { %p495_p9 = pneg %p494_p7 }
 0x124   : > { %p501_p0 = por %p500_p13, %p499_p12 }
 0x126   : > { %p502_p1 = pnand %p501_p0, %p495_p9 }
 0x128   : > { %505 = shalt.err (!%p502_p1)
}
 0x129   : > { %413 = dma.vmem_to_hbm [thread:$0]  (%p624_p4), %s665_s28, 128, %s663_s4, %s288_s26  }
 0x12a PF: > { %p419_p2 = scmp.ge.s32.totalorder %s556_s17, 2  ;;  %s314_s19 = sand.u32 1, %s536_s12  }
 0x12b   : > { %s315_s21 = scalar_lea.sflag [#allocation3], %s314_s19 }
 0x12c   : > { %p416_p3 = pnand %p419_p2, %p631_p8 }
 0x12e   : > { %531 = dma.done.wait (!%p416_p3), %s315_s21, 128  }
 0x12f   : > { %533 = vsyncadd (!%p416_p3), %s315_s21, 4294967168  ;;  %s16_s17 = sadd.s32 1, %s556_s17   ;;  %s716_s12 = smov %s540_s13 }
 0x130   : > { %p13_p5 = scmp.ge.s32.totalorder %s16_s17, 4   ;;  %s717_s13 = smov %s544_s14 }
 0x131   : > { %s718_s14 = smov %s637_s25  ;;  %s719_s15 = smov %s552_s16 }
 0x132   : > { %s720_s16 = smov %s722_s20  ;;  %15 = sbr.rel (!%p13_p5) target bundleno = 4 (0x4), region = 73 }
 0x139   :  { %320 = vsyncpa [#allocation3], 1 }
 0x13a   :  { %322 = vsyncpa [#allocation3 + $0x1], 1 }

</bundles_post_ra>
